<compile_context>
chip_gen: v5e
topology: v5e:2x2
jax: 0.10.0
libtpu: 0.0.40
codegen_flags: <defaults>
</compile_context>

<pallas_src>
import functools

import jax
import jax.numpy as jnp
from jax.experimental import pallas as pl
from jax.experimental.pallas import tpu as pltpu


# --------------------------------- kernel ------------------------------------
def dice_loss_kernel(score_ref, tgt_ref, w_ref, o_ref, *,
                     n_classes: int, apply_softmax: bool, smooth: float):
    # score_ref: (C, Np) f32   -- class-major, lane-dense (Np multiple of 128)
    # tgt_ref:   (1, Np) i32   -- integer labels, -1 marks padded columns
    # w_ref:     (C, 1)  f32   -- per-class weights
    # o_ref:     (1, 1)  f32   -- scalar loss
    s = score_ref[...].astype(jnp.float32)                    # (C, Np)
    t = jnp.broadcast_to(tgt_ref[...], s.shape)                # (C, Np) i32

    if apply_softmax:
        # softmax over the class (sublane) axis, matching torch.softmax(dim=1)
        s = jax.nn.softmax(s, axis=0)

    valid = (t >= 0).astype(jnp.float32)                       # mask padding
    s = s * valid

    cls = jax.lax.broadcasted_iota(jnp.int32, s.shape, 0)      # class index
    onehot = (t == cls).astype(jnp.float32)                    # (C, Np)

    # per-class reductions along the lane axis (keep 2-D throughout)
    intersect = jnp.sum(s * onehot, axis=1, keepdims=True)     # (C, 1)
    z_sum = jnp.sum(s * s, axis=1, keepdims=True)              # (C, 1)
    y_sum = jnp.sum(onehot, axis=1, keepdims=True)             # onehot^2==onehot

    dice = 1.0 - (2.0 * intersect + smooth) / (z_sum + y_sum + smooth)  # (C,1)
    weighted = dice * w_ref[...]                               # (C, 1)
    total = jnp.sum(weighted, axis=0, keepdims=True)           # (1, 1)
    o_ref[...] = total * (1.0 / float(n_classes))


# -------------------------------- wrapper ------------------------------------
def dice_loss(inputs, target, weight=None, softmax=False, smooth=1e-5):
    """inputs: (B, C, H, W) float scores; target: (B, H, W) integer labels."""
    B, C, H, W = inputs.shape
    N = B * H * W

    # class-major, lane-dense layout: (C, B*H*W)
    score = jnp.transpose(inputs, (1, 0, 2, 3)).reshape(C, N).astype(jnp.float32)
    tgt = target.reshape(1, N).astype(jnp.int32)

    # pad the lane axis to a multiple of 128; padded labels = -1 (masked out)
    Np = max(128, ((N + 127) // 128) * 128)
    if Np != N:
        score = jnp.pad(score, ((0, 0), (0, Np - N)))
        tgt = jnp.pad(tgt, ((0, 0), (0, Np - N)), constant_values=-1)

    if weight is None:
        w = jnp.ones((C, 1), jnp.float32)
    else:
        w = jnp.asarray(weight, jnp.float32).reshape(C, 1)

    kernel = functools.partial(
        dice_loss_kernel,
        n_classes=C,
        apply_softmax=bool(softmax),
        smooth=float(smooth),
    )

    out = pl.pallas_call(
        kernel,
        out_shape=jax.ShapeDtypeStruct((1, 1), jnp.float32),
        grid=(1,),
        in_specs=[
            pl.BlockSpec((C, Np), lambda i: (0, 0)),   # scores, whole slab
            pl.BlockSpec((1, Np), lambda i: (0, 0)),   # labels
            pl.BlockSpec((C, 1), lambda i: (0, 0)),    # class weights
        ],
        out_specs=pl.BlockSpec((1, 1), lambda i: (0, 0)),
        compiler_params=pltpu.CompilerParams(
            dimension_semantics=("arbitrary",)),
    )(score, tgt, w)
    return out[0, 0]


# --------------------------- pure-JAX reference -------------------------------
def dice_loss_reference(inputs, target, weight=None, softmax=False, smooth=1e-5):
    C = inputs.shape[1]
    x = jax.nn.softmax(inputs, axis=1) if softmax else inputs
    onehot = jax.nn.one_hot(target, C, axis=1, dtype=jnp.float32)
    if weight is None:
        weight = [1.0] * C
    loss = 0.0
    for i in range(C):
        s, t = x[:, i], onehot[:, i]
        intersect = jnp.sum(s * t)
        y = jnp.sum(t * t)
        z = jnp.sum(s * s)
        d = 1.0 - (2.0 * intersect + smooth) / (z + y + smooth)
        loss = loss + d * weight[i]
    return loss / C


# ------------------------------------ main ------------------------------------
if __name__ == "__main__":
    key = jax.random.PRNGKey(0)
    k_in, k_tgt = jax.random.split(key)

    B, C, H, W = 2, 4, 16, 16
    inputs = jax.random.normal(k_in, (B, C, H, W), jnp.float32)
    target = jax.random.randint(k_tgt, (B, H, W), 0, C, jnp.int32)

    # softmax=True path (typical usage)
    loss_sm = jax.block_until_ready(dice_loss(inputs, target, softmax=True))
    ref_sm = dice_loss_reference(inputs, target, softmax=True)
    assert jnp.isfinite(loss_sm)
    assert abs(float(loss_sm) - float(ref_sm)) < 1e-4, (loss_sm, ref_sm)

    # softmax=False path (module default), with explicit per-class weights
    wts = [1.0, 2.0, 0.5, 1.5]
    loss_raw = jax.block_until_ready(
        dice_loss(inputs, target, weight=wts, softmax=False))
    ref_raw = dice_loss_reference(inputs, target, weight=wts, softmax=False)
    assert jnp.isfinite(loss_raw)
    assert abs(float(loss_raw) - float(ref_raw)) < 1e-4, (loss_raw, ref_raw)

    print("KERNEL_OK")
</pallas_src>

<mosaic_0001>
module attributes {stable_mosaic.version = 11 : i64} {
  func.func @dice_loss_kernel(%arg0: i32, %arg1: memref<4x512xf32, #tpu.memory_space<vmem>>, %arg2: memref<1x512xi32, #tpu.memory_space<vmem>>, %arg3: memref<4x1xf32, #tpu.memory_space<vmem>>, %arg4: memref<1x1xf32, #tpu.memory_space<vmem>>) attributes {dimension_semantics = [#tpu.dimension_semantics<arbitrary>], iteration_bounds = array<i64: 1>, scalar_prefetch = 0 : i64, scratch_operands = 0 : i64, tpu.core_type = #tpu.core_type<tc>, window_params = [{pipeline_mode = #tpu.pipeline_mode<synchronous>, transform_indices = @transform_0, window_bounds = array<i64: 4, 512>}, {pipeline_mode = #tpu.pipeline_mode<synchronous>, transform_indices = @transform_1, window_bounds = array<i64: 1, 512>}, {pipeline_mode = #tpu.pipeline_mode<synchronous>, transform_indices = @transform_2, window_bounds = array<i64: 4, 1>}, {pipeline_mode = #tpu.pipeline_mode<synchronous>, transform_indices = @transform_3, window_bounds = array<i64: 1, 1>}]} {
    %c0 = arith.constant 0 : index
    %c0_0 = arith.constant 0 : index
    %0 = vector.load %arg1[%c0, %c0_0] : memref<4x512xf32, #tpu.memory_space<vmem>>, vector<4x512xf32>
    %c0_1 = arith.constant 0 : index
    %c0_2 = arith.constant 0 : index
    %1 = vector.load %arg2[%c0_1, %c0_2] : memref<1x512xi32, #tpu.memory_space<vmem>>, vector<1x512xi32>
    %2 = vector.shape_cast %1 : vector<1x512xi32> to vector<1x512xi32>
    %3 = vector.broadcast %2 : vector<1x512xi32> to vector<4x512xi32>
    %cst = arith.constant dense<0xFF800000> : vector<512xf32>
    %4 = vector.multi_reduction <maximumf>, %0, %cst [0] : vector<4x512xf32> to vector<512xf32>
    %cst_3 = arith.constant 0xFF800000 : f32
    %5 = vector.broadcast %cst_3 : f32 to vector<512xf32>
    %6 = arith.maximumf %5, %4 : vector<512xf32>
    %7 = vector.shape_cast %6 : vector<512xf32> to vector<1x512xf32>
    %8 = vector.broadcast %7 : vector<1x512xf32> to vector<4x512xf32>
    %9 = arith.subf %0, %8 : vector<4x512xf32>
    %10 = math.exp %9 : vector<4x512xf32>
    %cst_4 = arith.constant dense<0.000000e+00> : vector<512xf32>
    %11 = vector.multi_reduction <add>, %10, %cst_4 [0] : vector<4x512xf32> to vector<512xf32>
    %12 = vector.shape_cast %11 : vector<512xf32> to vector<1x512xf32>
    %13 = vector.broadcast %12 : vector<1x512xf32> to vector<4x512xf32>
    %14 = arith.divf %10, %13 : vector<4x512xf32>
    %c0_i32 = arith.constant 0 : i32
    %15 = vector.broadcast %c0_i32 : i32 to vector<4x512xi32>
    %16 = arith.cmpi sge, %3, %15 : vector<4x512xi32>
    %17 = arith.extui %16 : vector<4x512xi1> to vector<4x512xi32>
    %18 = arith.sitofp %17 : vector<4x512xi32> to vector<4x512xf32>
    %19 = arith.mulf %14, %18 : vector<4x512xf32>
    %20 = tpu.iota {dimensions = array<i32: 0>} : vector<4x512xi32>
    %21 = arith.cmpi eq, %3, %20 : vector<4x512xi32>
    %22 = arith.extui %21 : vector<4x512xi1> to vector<4x512xi32>
    %23 = arith.sitofp %22 : vector<4x512xi32> to vector<4x512xf32>
    %24 = arith.mulf %19, %23 : vector<4x512xf32>
    %cst_5 = arith.constant dense<0.000000e+00> : vector<4xf32>
    %25 = vector.multi_reduction <add>, %24, %cst_5 [1] : vector<4x512xf32> to vector<4xf32>
    %26 = vector.shape_cast %25 : vector<4xf32> to vector<4x1xf32>
    %27 = arith.mulf %19, %19 : vector<4x512xf32>
    %cst_6 = arith.constant dense<0.000000e+00> : vector<4xf32>
    %28 = vector.multi_reduction <add>, %27, %cst_6 [1] : vector<4x512xf32> to vector<4xf32>
    %29 = vector.shape_cast %28 : vector<4xf32> to vector<4x1xf32>
    %cst_7 = arith.constant dense<0.000000e+00> : vector<4xf32>
    %30 = vector.multi_reduction <add>, %23, %cst_7 [1] : vector<4x512xf32> to vector<4xf32>
    %31 = vector.shape_cast %30 : vector<4xf32> to vector<4x1xf32>
    %cst_8 = arith.constant 2.000000e+00 : f32
    %32 = vector.broadcast %cst_8 : f32 to vector<4x1xf32>
    %33 = arith.mulf %32, %26 : vector<4x1xf32>
    %cst_9 = arith.constant 9.99999974E-6 : f32
    %34 = vector.broadcast %cst_9 : f32 to vector<4x1xf32>
    %35 = arith.addf %33, %34 : vector<4x1xf32>
    %36 = arith.addf %29, %31 : vector<4x1xf32>
    %cst_10 = arith.constant 9.99999974E-6 : f32
    %37 = vector.broadcast %cst_10 : f32 to vector<4x1xf32>
    %38 = arith.addf %36, %37 : vector<4x1xf32>
    %39 = arith.divf %35, %38 : vector<4x1xf32>
    %cst_11 = arith.constant 1.000000e+00 : f32
    %40 = vector.broadcast %cst_11 : f32 to vector<4x1xf32>
    %41 = arith.subf %40, %39 : vector<4x1xf32>
    %c0_12 = arith.constant 0 : index
    %c0_13 = arith.constant 0 : index
    %42 = vector.load %arg3[%c0_12, %c0_13] : memref<4x1xf32, #tpu.memory_space<vmem>>, vector<4x1xf32>
    %43 = arith.mulf %41, %42 : vector<4x1xf32>
    %cst_14 = arith.constant dense<0.000000e+00> : vector<1xf32>
    %44 = vector.multi_reduction <add>, %43, %cst_14 [0] : vector<4x1xf32> to vector<1xf32>
    %45 = vector.shape_cast %44 : vector<1xf32> to vector<1x1xf32>
    %cst_15 = arith.constant 2.500000e-01 : f32
    %46 = vector.broadcast %cst_15 : f32 to vector<1x1xf32>
    %47 = arith.mulf %45, %46 : vector<1x1xf32>
    %c0_16 = arith.constant 0 : index
    %c0_17 = arith.constant 0 : index
    %48 = vector.load %arg4[%c0_16, %c0_17] : memref<1x1xf32, #tpu.memory_space<vmem>>, vector<1x1xf32>
    tpu.vector_store %arg4[%c0_16, %c0_17], %47 {strides = array<i32>} : memref<1x1xf32, #tpu.memory_space<vmem>>, vector<1x1xf32>,
    return
  }
  func.func @transform_0(%arg0: i32) -> (i32, i32) {
    %c0_i32 = arith.constant 0 : i32
    %c0_i32_0 = arith.constant 0 : i32
    %c0_i32_1 = arith.constant 0 : i32
    return %c0_i32, %c0_i32_0 : i32, i32
  }
  func.func @transform_1(%arg0: i32) -> (i32, i32) {
    %c0_i32 = arith.constant 0 : i32
    %c0_i32_0 = arith.constant 0 : i32
    %c0_i32_1 = arith.constant 0 : i32
    return %c0_i32, %c0_i32_0 : i32, i32
  }
  func.func @transform_2(%arg0: i32) -> (i32, i32) {
    %c0_i32 = arith.constant 0 : i32
    %c0_i32_0 = arith.constant 0 : i32
    %c0_i32_1 = arith.constant 0 : i32
    return %c0_i32, %c0_i32_0 : i32, i32
  }
  func.func @transform_3(%arg0: i32) -> (i32, i32) {
    %c0_i32 = arith.constant 0 : i32
    %c0_i32_0 = arith.constant 0 : i32
    %c0_i32_1 = arith.constant 0 : i32
    return %c0_i32, %c0_i32_0 : i32, i32
  }
}

</mosaic_0001>

<bundles_post_ra>
// kernel: tpu_custom_call.1
= control target key start
LH: loop header
LB: loop body
LE: loop exit
PB: predicated region body
PF: predicated region fallthrough
CT: control target
= control target key end

     0   :  { %8 = vsyncpa [#allocation3], 0  ;;  %s505_s0 = inlined_call_operand.hbm [shape: f32[4,512], index: 0, kind: input, shape index: {}]   ;;  %s506_s1 = inlined_call_operand.vmem [shape: s32[1,512], index: 1, kind: input, shape index: {}]   ;;  %s507_s2 = inlined_call_operand.vmem [shape: f32[4,1], index: 2, kind: input, shape index: {}]   ;;  %s508_s3 = inlined_call_operand.hbm [shape: f32[1,1], index: 3, kind: output, shape index: {}]  }
   0x1   :  { %9 = vsyncpa [#allocation4], 0  ;;  %s15_s14 = sshll.u32 %s505_s0, 4  ;;  %s403_s15 = smov [#allocation2]   ;;  %s16_s14 = int_to_ptr.hbm [resolvable:$true] %s15_s14 }
   0x2   :  { %s17_s16 = sshll.u32 %s403_s15, 4  ;;  %s18_s16 = int_to_ptr.vmem [resolvable:$true] %s17_s16 }
   0x3   :  { %20 = dma.hbm_to_vmem [thread:$0]  %s16_s14, 256, %s18_s16, [#allocation3]  }
   0x4   :  { %399 = dma.done.wait [#allocation3], 256  }
   0x5   :  { %400 = vsyncadd [#allocation3], 4294967040  ;;  %v29_v0 = vld [vmem:[#allocation2] sm:$0xff]  ;;  %v30_v1 = vld [vmem:[#allocation2 + $0x8] sm:$0xff]  ;;  %vm49_vm0 = vcmask 1043456   ;;  %s405_s19 = smov [#allocation5]  }
   0x6   :  { %38 = vst [vmem:[#allocation1] ss:$2 sm:$0xff] %v29_v0  ;;  %s318_s20 = sshll.u32 %s405_s19, 4  ;;  %s320_s23 = sshll.u32 %s508_s3, 4  ;;  %s319_s20 = int_to_ptr.vmem [resolvable:$true] %s318_s20  ;;  %s321_s23 = int_to_ptr.hbm [resolvable:$true] %s320_s23 }
   0x7   :  { %40 = vst [vmem:[#allocation1 + $0x10] ss:$2 sm:$0xff] %v30_v1 }
   0xd   :  { %v41_v2 = vld.sshfl [vmem:[#allocation1] sm:$0xff pattern:$0x75316420]  ;;  %v42_v3 = vld.sshfl [vmem:[#allocation1 + $0x8] sm:$0xff pattern:$0x75316420] }
   0xe   :  { %v43_v4 = vld.sshfl [vmem:[#allocation1 + $0x10] sm:$0xff pattern:$0x75316420]  ;;  %v44_v5 = vld.sshfl [vmem:[#allocation1 + $0x18] sm:$0xff pattern:$0x75316420] }
   0xf   :  { %v50_v6 = vsel %vm49_vm0, %v41_v2, -inf  ;;  %v57_v7 = vsel %vm49_vm0, %v42_v3, -inf  ;;  %v64_v8 = vsel %vm49_vm0, %v43_v4, -inf  ;;  %v71_v9 = vsel %vm49_vm0, %v44_v5, -inf }
  0x10   :  { %v51_v10 = vrot.slane %v50_v6, 4  ;;  %v58_v11 = vrot.slane %v57_v7, 4  ;;  %v65_v12 = vrot.slane %v64_v8, 4  ;;  %v72_v13 = vrot.slane %v71_v9, 4 }
  0x12   :  { %v52_v14 = vmax.f32 %v50_v6, %v51_v10  ;;  %v59_v15 = vmax.f32 %v57_v7, %v58_v11  ;;  %v66_v16 = vmax.f32 %v64_v8, %v65_v12  ;;  %v73_v17 = vmax.f32 %v71_v9, %v72_v13  ;;  %v31_v12 = vld [vmem:[%s506_s1] sm:$0xf] }
  0x14   :  { %v53_v18 = vrot.slane %v52_v14, 2  ;;  %v60_v19 = vrot.slane %v59_v15, 2  ;;  %v67_v20 = vrot.slane %v66_v16, 2  ;;  %v74_v21 = vrot.slane %v73_v17, 2 }
  0x16   :  { %v54_v22 = vmax.f32 %v52_v14, %v53_v18  ;;  %v61_v23 = vmax.f32 %v59_v15, %v60_v19  ;;  %v68_v24 = vmax.f32 %v66_v16, %v67_v20  ;;  %v75_v25 = vmax.f32 %v73_v17, %v74_v21 }
  0x17   :  { %v32_v15 = vperm.slane %v31_v12, 0  ;;  %v199_v18 = vlaneseq  ;;  %v33_v19 = vperm.slane %v31_v12, 1  ;;  %v35_v20 = vperm.slane %v31_v12, 3 }
  0x18   :  { %v55_v26 = vrot.slane %v54_v22, 1  ;;  %v62_v27 = vrot.slane %v61_v23, 1  ;;  %v69_v28 = vrot.slane %v68_v24, 1  ;;  %v76_v29 = vrot.slane %v75_v25, 1 }
  0x19   :  { %v34_v21 = vperm.slane %v31_v12, 2  ;;  %vm175_vm1 = vcmp.ge.s32.totalorder %v32_v15, 0  ;;  %vm176_vm2 = vcmp.ge.s32.totalorder %v33_v19, 0  ;;  %vm178_vm3 = vcmp.ge.s32.totalorder %v35_v20, 0 }
  0x1a   :  { %v56_v30 = vmax.f32 %v54_v22, %v55_v26  ;;  %v63_v31 = vmax.f32 %v61_v23, %v62_v27  ;;  %v70_v32 = vmax.f32 %v68_v24, %v69_v28  ;;  %v77_v33 = vmax.f32 %v75_v25, %v76_v29 }
  0x1b   :  { %v200_v22 = vshrl.u32 %v199_v18, 7  ;;  %vm450_vm4 = vcmp.ge.s32.totalorder %v34_v21, 0  ;;  %v404_v25 = vmov 0.0  }
  0x1c   :  { %v82_v34 = vrot.slane %v63_v31, 4  ;;  %v83_v35 = vrot.slane %v77_v33, 4  ;;  %v330_v26 = vsel %vm175_vm1, 1.0, %v404_v25  ;;  %v331_v29 = vsel %vm176_vm2, 1.0, %v404_v25 }
  0x1d   :  { %vm454_vm5 = vcmp.eq.s32.totalorder %v33_v19, %v200_v22  ;;  %vm458_vm7 = vcmp.eq.s32.totalorder %v35_v20, %v200_v22  ;;  %vm201_vm12 = vcmp.eq.s32.totalorder %v32_v15, %v200_v22  ;;  %vm203_vm15 = vcmp.eq.s32.totalorder %v34_v21, %v200_v22 }
  0x1e   :  { %v84_v36 = vsel %vm49_vm0, %v56_v30, %v82_v34  ;;  %v85_v37 = vsel %vm49_vm0, %v70_v32, %v83_v35  ;;  %v333_v30 = vsel %vm178_vm3, 1.0, %v404_v25 }
  0x1f   :  { %v88_v38 = vsub.f32 %v29_v0, %v84_v36  ;;  %v89_v39 = vsub.f32 %v30_v1, %v85_v37 }
  0x21   :  { %v90_v40 = vmul.f32 1.442695, %v88_v38  ;;  %v92_v41 = vmul.f32 1.442695, %v89_v39 }
  0x23   :  { %341 = vpow2.f32 %v90_v40 }
  0x24   :  { %343 = vpow2.f32 %v92_v41  ;;  %v191_v41 = vrot.slane %v331_v29, 4 }
  0x29   :  { %v435_v42 = vpop.eup %341 }
  0x2a   :  { %v437_v43 = vpop.eup %343  ;;  %96 = vst [vmem:[#allocation1] ss:$2 sm:$0xff] %v435_v42 }
  0x2b   :  { %98 = vst [vmem:[#allocation1 + $0x10] ss:$2 sm:$0xff] %v437_v43 }
  0x31   :  { %v99_v44 = vld.sshfl [vmem:[#allocation1] sm:$0xff pattern:$0x75316420]  ;;  %v100_v45 = vld.sshfl [vmem:[#allocation1 + $0x8] sm:$0xff pattern:$0x75316420] }
  0x32   :  { %v101_v46 = vld.sshfl [vmem:[#allocation1 + $0x10] sm:$0xff pattern:$0x75316420]  ;;  %v102_v47 = vld.sshfl [vmem:[#allocation1 + $0x18] sm:$0xff pattern:$0x75316420] }
  0x33   :  { %v107_v48 = vsel %vm49_vm0, %v99_v44, 0.0  ;;  %v114_v49 = vsel %vm49_vm0, %v100_v45, 0.0  ;;  %v121_v50 = vsel %vm49_vm0, %v101_v46, 0.0  ;;  %v128_v51 = vsel %vm49_vm0, %v102_v47, 0.0 }
  0x34   :  { %v108_v52 = vrot.slane %v107_v48, 4  ;;  %v115_v53 = vrot.slane %v114_v49, 4  ;;  %v122_v54 = vrot.slane %v121_v50, 4  ;;  %v129_v55 = vrot.slane %v128_v51, 4 }
  0x35   :  { %v192_v44 = vrot.slane %v333_v30, 4  ;;  %v335_v45 = vsel %vm454_vm5, 1.0, %v404_v25  ;;  %vm302_vm5 = vcmask 3072  }
  0x36   :  { %v109_v56 = vadd.f32 %v108_v52, %v107_v48  ;;  %v116_v57 = vadd.f32 %v115_v53, %v114_v49  ;;  %v123_v58 = vadd.f32 %v122_v54, %v121_v50  ;;  %v130_v59 = vadd.f32 %v129_v55, %v128_v51 }
  0x37   :  { %v337_v49 = vsel %vm458_vm7, 1.0, %v404_v25  ;;  %v332_v54 = vsel %vm450_vm4, 1.0, %v404_v25  ;;  %v217_v55 = vrot.slane %v335_v45, 4 }
  0x38   :  { %v110_v60 = vrot.slane %v109_v56, 2  ;;  %v117_v61 = vrot.slane %v116_v57, 2  ;;  %v124_v62 = vrot.slane %v123_v58, 2  ;;  %v131_v63 = vrot.slane %v130_v59, 2 }
  0x3a   :  { %v111_v0 = vadd.f32 %v110_v60, %v109_v56  ;;  %v118_v1 = vadd.f32 %v117_v61, %v116_v57  ;;  %v125_v2 = vadd.f32 %v124_v62, %v123_v58  ;;  %v132_v3 = vadd.f32 %v131_v63, %v130_v59 }
  0x3b   :  { %v334_v57 = vsel %vm201_vm12, 1.0, %v404_v25  ;;  %v218_v58 = vrot.slane %v337_v49, 4  ;;  %v193_v61 = vsel %vm49_vm0, %v330_v26, %v191_v41  ;;  %v336_v62 = vsel %vm203_vm15, 1.0, %v404_v25 }
  0x3c   :  { %v112_v4 = vrot.slane %v111_v0, 1  ;;  %v119_v5 = vrot.slane %v118_v1, 1  ;;  %v126_v6 = vrot.slane %v125_v2, 1  ;;  %v133_v7 = vrot.slane %v132_v3, 1 }
  0x3d   :  { %v271_v20 = vsel %vm49_vm0, %v334_v57, 0.0 }
  0x3e   :  { %v113_v8 = vadd.f32 %v112_v4, %v111_v0  ;;  %v120_v9 = vadd.f32 %v119_v5, %v118_v1  ;;  %v127_v10 = vadd.f32 %v126_v6, %v125_v2  ;;  %v134_v11 = vadd.f32 %v133_v7, %v132_v3 }
  0x3f   :  { %v194_v1 = vsel %vm49_vm0, %v332_v54, %v192_v44  ;;  %v219_v3 = vsel %vm49_vm0, %v334_v57, %v217_v55  ;;  %v220_v5 = vsel %vm49_vm0, %v336_v62, %v218_v58  ;;  %v300_v58 = vld [vmem:[%s507_s2] sm:$0xf] }
  0x40   :  { %v139_v13 = vrot.slane %v120_v9, 4  ;;  %v140_v14 = vrot.slane %v134_v11, 4 }
  0x42   :  { %v141_v16 = vsel %vm49_vm0, %v113_v8, %v139_v13  ;;  %v142_v17 = vsel %vm49_vm0, %v127_v10, %v140_v14 }
  0x43   :  { %345 = vrcp.f32 %v141_v16  ;;  %vm150_vm6 = vweird.f32 %v141_v16  ;;  %v156_v32 = vand.u32 2147483648, %v141_v16  ;;  %v154_v36 = vand.u32 2147483647, %v141_v16 }
  0x44   :  { %347 = vrcp.f32 %v142_v17  ;;  %v171_v37 = vand.u32 2147483648, %v142_v17  ;;  %vm165_vm9 = vweird.f32 %v142_v17  ;;  %v169_v39 = vand.u32 2147483647, %v142_v17 }
  0x45   :  { %v157_v47 = vor.u32 1.1754944e-38, %v156_v32  ;;  %vm155_vm13 = vcmp.eq.f32.partialorder %v154_v36, 8.507059e+37  ;;  %v276_v36 = vsel %vm49_vm0, %v337_v49, 0.0 }
  0x46   :  { %v172_v52 = vor.u32 1.1754944e-38, %v171_v37  ;;  %vm170_vm1 = vcmp.eq.f32.partialorder %v169_v39, 8.507059e+37 }
  0x49   :  { %v346_v23 = vpop.eup %345 }
  0x4a   :  { %v348_v27 = vpop.eup %347  ;;  %v146_v28 = vmul.f32 %v346_v23, %v141_v16  ;;  %vm151_vm8 = vweird.f32 %v346_v23 }
  0x4b   :  { %v161_v33 = vmul.f32 %v348_v27, %v142_v17  ;;  %vm166_vm10 = vweird.f32 %v348_v27  ;;  %vm465_vm11 = vmor %vm150_vm6, %vm151_vm8  ;;  %vm311_vm6 = vcmask 0  }
  0x4c   :  { %v147_v35 = vsub.f32 1.0, %v146_v28  ;;  %vm471_vm14 = vmor %vm165_vm9, %vm166_vm10  ;;  %v272_v28 = vsel %vm49_vm0, %v335_v45, 0.0 }
  0x4d   :  { %v162_v38 = vsub.f32 1.0, %v161_v33  ;;  %v273_v32 = vadd.f32 %v272_v28, %v271_v20  ;;  %v274_v33 = vsel %vm49_vm0, %v336_v62, 0.0 }
  0x4e   :  { %v148_v40 = vmul.f32 %v346_v23, %v147_v35 }
  0x4f   :  { %v163_v48 = vmul.f32 %v348_v27, %v162_v38  ;;  %v275_v35 = vadd.f32 %v274_v33, %v273_v32 }
  0x50   :  { %v149_v50 = vadd.f32 %v346_v23, %v148_v40 }
  0x51   :  { %v164_v53 = vadd.f32 %v348_v27, %v163_v48  ;;  %v277_v37 = vadd.f32 %v276_v36, %v275_v35 }
  0x52   :  { %v153_v56 = vsel %vm465_vm11, %v346_v23, %v149_v50 }
  0x53   :  { %v158_v59 = vsel %vm155_vm13, %v157_v47, %v153_v56  ;;  %v168_v60 = vsel %vm471_vm14, %v348_v27, %v164_v53 }
  0x54   :  { %v159_v63 = vmul.f32 %v435_v42, %v158_v59  ;;  %v173_v0 = vsel %vm170_vm1, %v172_v52, %v168_v60 }
  0x55   :  { %v174_v2 = vmul.f32 %v437_v43, %v173_v0 }
  0x56   :  { %v197_v4 = vmul.f32 %v193_v61, %v159_v63 }
  0x57   :  { %v198_v6 = vmul.f32 %v194_v1, %v174_v2 }
  0x58   :  { %v223_v7 = vmul.f32 %v219_v3, %v197_v4  ;;  %v247_v9 = vmul.f32 %v197_v4, %v197_v4 }
  0x59   :  { %v224_v8 = vmul.f32 %v220_v5, %v198_v6  ;;  %v248_v10 = vmul.f32 %v198_v6, %v198_v6 }
  0x5a   :  { %227 = vst [vmem:[#allocation1] ss:$2 sm:$0xff] %v223_v7 }
  0x5b   :  { %229 = vst [vmem:[#allocation1 + $0x10] ss:$2 sm:$0xff] %v224_v8 }
  0x61   :  { %v230_v11 = vld.sshfl [vmem:[#allocation1] sm:$0xff pattern:$0x75316420]  ;;  %v231_v12 = vld.sshfl [vmem:[#allocation1 + $0x8] sm:$0xff pattern:$0x75316420] }
  0x62   :  { %v232_v42 = vld.sshfl [vmem:[#allocation1 + $0x10] sm:$0xff pattern:$0x75316420]  ;;  %v233_v13 = vld.sshfl [vmem:[#allocation1 + $0x18] sm:$0xff pattern:$0x75316420] }
  0x63   :  { %251 = vst [vmem:[#allocation1] ss:$2 sm:$0xff] %v247_v9  ;;  %v238_v14 = vsel %vm49_vm0, %v230_v11, 0.0  ;;  %v239_v43 = vsel %vm49_vm0, %v231_v12, 0.0  ;;  %v241_v15 = vsel %vm49_vm0, %v232_v42, 0.0  ;;  %v243_v17 = vsel %vm49_vm0, %v233_v13, 0.0 }
  0x64   :  { %253 = vst [vmem:[#allocation1 + $0x10] ss:$2 sm:$0xff] %v248_v10  ;;  %v240_v16 = vadd.f32 %v239_v43, %v238_v14 }
  0x66   :  { %v242_v18 = vadd.f32 %v241_v15, %v240_v16 }
  0x68   :  { %v244_v19 = vadd.f32 %v243_v17, %v242_v18 }
  0x6a   :  { %v254_v21 = vld.sshfl [vmem:[#allocation1] sm:$0xff pattern:$0x75316420]  ;;  %v255_v22 = vld.sshfl [vmem:[#allocation1 + $0x8] sm:$0xff pattern:$0x75316420]  ;;  %245 = vadd.xlane.f32.xlu1 %v244_v19 }
  0x6b   :  { %v256_v23 = vld.sshfl [vmem:[#allocation1 + $0x10] sm:$0xff pattern:$0x75316420]  ;;  %v257_v24 = vld.sshfl [vmem:[#allocation1 + $0x18] sm:$0xff pattern:$0x75316420] }
  0x6c   :  { %v262_v25 = vsel %vm49_vm0, %v254_v21, 0.0  ;;  %v263_v26 = vsel %vm49_vm0, %v255_v22, 0.0  ;;  %v265_v27 = vsel %vm49_vm0, %v256_v23, 0.0  ;;  %v267_v30 = vsel %vm49_vm0, %v257_v24, 0.0 }
  0x6d   :  { %v264_v29 = vadd.f32 %v263_v26, %v262_v25 }
  0x6f   :  { %v266_v31 = vadd.f32 %v265_v27, %v264_v29 }
  0x71   :  { %v268_v34 = vadd.f32 %v267_v30, %v266_v31 }
  0x73   :  { %269 = vadd.xlane.f32.xlu0 %v268_v34 }
  0x7b   :  { %278 = vadd.xlane.f32.xlu0 %v277_v37 }
  0xdd   :  { %v246_v45 = vpop.xlane.xlu1 %245 }
  0xde   :  { %v280_v48 = vmul.f32 2.0, %v246_v45 }
  0xe0   :  { %v281_v54 = vadd.f32 1e-05, %v280_v48 }
  0xe6   :  { %v270_v38 = vpop.xlane.xlu0 %269 }
  0xee   :  { %v279_v39 = vpop.xlane.xlu0 %278 }
  0xef   :  { %v282_v40 = vadd.f32 %v279_v39, %v270_v38 }
  0xf1   :  { %v283_v41 = vadd.f32 1e-05, %v282_v40 }
  0xf3   :  { %349 = vrcp.f32 %v283_v41  ;;  %v295_v50 = vand.u32 2147483648, %v283_v41  ;;  %v293_v52 = vand.u32 2147483647, %v283_v41  ;;  %vm289_vm3 = vweird.f32 %v283_v41 }
  0xf5   :  { %v296_v49 = vor.u32 1.1754944e-38, %v295_v50  ;;  %vm294_vm4 = vcmp.eq.f32.partialorder %v293_v52, 8.507059e+37 }
  0xf9   :  { %v350_v44 = vpop.eup %349 }
  0xfa   :  { %v285_v46 = vmul.f32 %v350_v44, %v283_v41  ;;  %vm290_vm2 = vweird.f32 %v350_v44 }
  0xfb   :  { %vm291_vm0 = vmor %vm289_vm3, %vm290_vm2 }
  0xfc   :  { %v286_v47 = vsub.f32 1.0, %v285_v46 }
  0xfe   :  { %v287_v51 = vmul.f32 %v350_v44, %v286_v47 }
 0x100   :  { %v288_v53 = vadd.f32 %v350_v44, %v287_v51 }
 0x102   :  { %v292_v55 = vsel %vm291_vm0, %v350_v44, %v288_v53 }
 0x103   :  { %v297_v56 = vsel %vm294_vm4, %v296_v49, %v292_v55 }
 0x104   :  { %v298_v57 = vmul.f32 %v297_v56, %v281_v54 }
 0x106   :  { %v299_v59 = vsub.f32 1.0, %v298_v57 }
 0x108   :  { %v301_v60 = vmul.f32 %v300_v58, %v299_v59 }
 0x10a   :  { %v303_v61 = vsel %vm302_vm5, %v301_v60, 0.0 }
 0x10b   :  { %v304_v62 = vrot.slane %v303_v61, 4 }
 0x10d   :  { %v305_v63 = vadd.f32 %v304_v62, %v303_v61 }
 0x10f   :  { %v306_v0 = vrot.slane %v305_v63, 2 }
 0x111   :  { %v307_v1 = vadd.f32 %v306_v0, %v305_v63 }
 0x113   :  { %v308_v2 = vrot.slane %v307_v1, 1 }
 0x115   :  { %v309_v3 = vadd.f32 %v308_v2, %v307_v1 }
 0x117   :  { %v310_v4 = vmul.f32 0.25, %v309_v3 }
 0x119   :  { %312 = vst.msk [vmem:[#allocation5] sm:$0x1] %vm311_vm6, %v310_v4 }
 0x11a   :  { %323 = dma.vmem_to_hbm [thread:$0]  %s319_s20, 16, %s321_s23, [#allocation4]  }
 0x11b   :  { %401 = dma.done.wait [#allocation4], 16  }
 0x11c   :  { %402 = vsyncadd [#allocation4], 4294967280 }
 0x11d   :  { %328 = vsyncpa [#allocation3], 1 }
 0x11e   :  { %329 = vsyncpa [#allocation4], 1 }

</bundles_post_ra>
